<compile_context>
chip_gen: v6e
topology: v6e:2x2x1
jax: 0.10.0
libtpu: 0.0.40
codegen_flags: <defaults>
</compile_context>

<pallas_src>
import functools

import jax
import jax.numpy as jnp
from jax.experimental import pallas as pl
from jax.experimental.pallas import tpu as pltpu


_VMEM_INPUT_BUDGET = 24 * 1024 * 1024   # double-buffered input blocks
_VMEM_LIMIT_BYTES = 48 * 1024 * 1024    # > v5e 16 MiB scoped default, < v7x 64 MiB phys
_MIN_TILES = 4                          # keep >= 4 grid tiles for v7x megacore


def _round_up(x, m):
    return ((x + m - 1) // m) * m


def _focal_pow(one_minus_p, gamma):
    """(1 - p)**gamma; unrolled multiplies for small integer gamma."""
    g = float(gamma)
    if g == 0.0:
        return jnp.ones_like(one_minus_p)
    if g.is_integer() and 1.0 <= g <= 8.0:
        w = one_minus_p
        for _ in range(int(g) - 1):
            w = w * one_minus_p
        return w
    return one_minus_p ** g


def _write_partials(out_ref, tile_sum, tile_cnt):
    # Single (1, 1, 128) block per tile: loss-sum in lane 0, valid-count in lane 1.
    lane = jax.lax.broadcasted_iota(jnp.int32, out_ref.shape, 2)
    out_ref[...] = jnp.where(lane == 0, tile_sum,
                             jnp.where(lane == 1, tile_cnt, 0.0))


def _focal_kernel_class_major(logits_ref, tgt_ref, out_ref, *,
                              alpha, gamma, ignore_label, n_rows):
    """Class-major path (C <= 128). logits_ref: (C, tn), tgt_ref: (1, tn)."""
    i = pl.program_id(0)
    tn = logits_ref.shape[1]

    logits = logits_ref[...].astype(jnp.float32)              # (C, tn)
    tgt = tgt_ref[...]                                         # (1, tn) int32

    # Softmax pieces over the class (sublane) axis; rows stay lane-dense.
    m = jnp.max(logits, axis=0, keepdims=True)                 # (1, tn)
    e = jnp.exp(logits - m)                                    # (C, tn) — only big exp
    s = jnp.sum(e, axis=0, keepdims=True)                      # (1, tn)

    # Reuse e for the target gather: e_t == exp(logit_t - m).
    class_idx = jax.lax.broadcasted_iota(jnp.int32, logits.shape, 0)
    e_t = jnp.sum(jnp.where(class_idx == tgt, e, 0.0),
                  axis=0, keepdims=True)                       # (1, tn)

    p_t = e_t / s                                              # exact divide for parity
    log_pt = jnp.log(p_t + 1e-12)                              # keep +1e-12 for parity
    w = _focal_pow(1.0 - p_t, gamma)
    row_loss = (-alpha) * w * log_pt                           # (1, tn)

    # Validity mask: in-bounds rows (partial last tile) and not-ignored rows.
    row_idx = i * tn + jax.lax.broadcasted_iota(jnp.int32, (1, tn), 1)
    valid = row_idx < n_rows
    if ignore_label is not None:
        valid = jnp.logical_and(valid, tgt != ignore_label)

    tile_sum = jnp.sum(jnp.where(valid, row_loss, 0.0))
    tile_cnt = jnp.sum(valid.astype(jnp.float32))
    _write_partials(out_ref, tile_sum, tile_cnt)


def _focal_kernel_row_major(logits_ref, tgt_ref, out_ref, *,
                            alpha, gamma, ignore_label, n_rows):
    """Fallback for C > 128. logits_ref: (tn, C), tgt_ref: (tn, 1)."""
    i = pl.program_id(0)
    tn = logits_ref.shape[0]

    logits = logits_ref[...].astype(jnp.float32)               # (tn, C)
    tgt = tgt_ref[...]                                          # (tn, 1) int32

    m = jnp.max(logits, axis=-1, keepdims=True)                 # (tn, 1)
    e = jnp.exp(logits - m)                                     # (tn, C)
    s = jnp.sum(e, axis=-1, keepdims=True)                      # (tn, 1)

    class_idx = jax.lax.broadcasted_iota(jnp.int32, logits.shape, 1)
    e_t = jnp.sum(jnp.where(class_idx == tgt, e, 0.0),
                  axis=-1, keepdims=True)                       # (tn, 1)

    p_t = e_t / s
    log_pt = jnp.log(p_t + 1e-12)
    w = _focal_pow(1.0 - p_t, gamma)
    row_loss = (-alpha) * w * log_pt                            # (tn, 1)

    row_idx = i * tn + jax.lax.broadcasted_iota(jnp.int32, (tn, 1), 0)
    valid = row_idx < n_rows
    if ignore_label is not None:
        valid = jnp.logical_and(valid, tgt != ignore_label)

    tile_sum = jnp.sum(jnp.where(valid, row_loss, 0.0))
    tile_cnt = jnp.sum(valid.astype(jnp.float32))
    _write_partials(out_ref, tile_sum, tile_cnt)


def focal_loss(output, target, *, alpha=1.0, gamma=2.0, ignore_label=None,
               max_row_tile=32768):
    """output: [N, C] float logits; target: [N] int labels. Returns scalar f32.

    Row-tile sizing: tn is derived from a ~24 MiB double-buffered input budget
    (logits block + target block), capped at max_row_tile and at
    round_up(cdiv(N, 4), lane/sublane alignment) so the "parallel" grid axis has
    at least ~4 tiles for v7x megacore sharding.  vmem_limit_bytes is set to
    48 MiB (fits v7x's 64 MiB physical, raises v5e's 16 MiB scoped default).
    """
    N, C = output.shape
    target = target.astype(jnp.int32)
    class_major = C <= 128

    if class_major:
        # logits block (C, tn): round_up(C,8) sublanes * tn lanes * 4 B
        # target block (1, tn): 8 sublanes (padded) * tn lanes * 4 B
        per_row = 2 * (_round_up(C, 8) * 4 + 8 * 4)
        align = 128                      # rows are on the lane axis
    else:
        # logits block (tn, C): tn * round_up(C,128) * 4 B
        # target block (tn, 1): 512 B / row (8x128 tile per 8 rows)
        per_row = 2 * (_round_up(C, 128) * 4 + 512)
        align = 8                        # rows are on the sublane axis

    tn_cap = _VMEM_INPUT_BUDGET // per_row
    tn_cap = min(tn_cap, int(max_row_tile))
    tn_cap = min(tn_cap, _round_up(pl.cdiv(N, _MIN_TILES), align))
    tn_cap = max(tn_cap, align)
    if tn_cap >= N:
        tn = N                            # single tile; block dim == full dim is legal
    else:
        tn = max((tn_cap // align) * align, align)
    num_tiles = pl.cdiv(N, tn)

    cost = pl.CostEstimate(
        flops=int(6 * N * C + 16 * N),
        transcendentals=int(N * C + 2 * N),
        bytes_accessed=int(N * C * 4 + N * 4 + num_tiles * 128 * 4))

    if class_major:
        kernel = functools.partial(
            _focal_kernel_class_major, alpha=float(alpha), gamma=float(gamma),
            ignore_label=ignore_label, n_rows=N)
        logits_in = output.T                  # (C, N): rows on the 128-lane axis
        tgt_in = target.reshape(1, N)         # lane-dense targets
        in_specs = [
            pl.BlockSpec((C, tn), lambda i: (0, i)),
            pl.BlockSpec((1, tn), lambda i: (0, i)),
        ]
    else:
        # TODO(synk): vocab-scale C should add an inner "arbitrary" C-tile grid
        # axis with online max/sum accumulation (and bf16 logits) instead of
        # whole-C rows; not implemented here.
        kernel = functools.partial(
            _focal_kernel_row_major, alpha=float(alpha), gamma=float(gamma),
            ignore_label=ignore_label, n_rows=N)
        logits_in = output
        tgt_in = target.reshape(N, 1)
        in_specs = [
            pl.BlockSpec((tn, C), lambda i: (i, 0)),
            pl.BlockSpec((tn, 1), lambda i: (i, 0)),
        ]

    partials = pl.pallas_call(
        kernel,
        out_shape=jax.ShapeDtypeStruct((num_tiles, 1, 128), jnp.float32),
        grid_spec=pltpu.PrefetchScalarGridSpec(
            num_scalar_prefetch=0,
            grid=(num_tiles,),
            in_specs=in_specs,
            out_specs=pl.BlockSpec((1, 1, 128), lambda i: (i, 0, 0)),
        ),
        compiler_params=pltpu.CompilerParams(
            dimension_semantics=("parallel",),
            vmem_limit_bytes=_VMEM_LIMIT_BYTES),
        cost_estimate=cost,
    )(logits_in, tgt_in)

    total = jnp.sum(partials[:, 0, 0])
    count = jnp.sum(partials[:, 0, 1])
    # count == 0 (all rows ignored) -> NaN, same as the PyTorch reference.
    return total / count


def _reference_focal_loss(output, target, alpha=1.0, gamma=2.0,
                          ignore_label=None):
    output = output.astype(jnp.float32)
    if ignore_label is not None:
        valid = (target != ignore_label).astype(jnp.float32)
    else:
        valid = jnp.ones(target.shape, dtype=jnp.float32)
    onehot = jax.nn.one_hot(target, output.shape[1], dtype=jnp.float32)
    prob = jax.nn.softmax(output, axis=-1)
    focal_w = alpha * (1.0 - prob) ** gamma
    loss = -focal_w * onehot * jnp.log(prob + 1e-12)
    row = loss.sum(axis=1)
    return (row * valid).sum() / valid.sum()


if __name__ == "__main__":
    key = jax.random.PRNGKey(0)
    k1, k2, k3, k4 = jax.random.split(key, 4)

    # Case 1: class-major lane-dense path, multi-tile (N=256 -> 2 x 128-row tiles).
    N, C = 256, 10
    logits = jax.random.normal(k1, (N, C), dtype=jnp.float32)
    labels = jax.random.randint(k2, (N,), 0, C, dtype=jnp.int32)
    loss = jax.block_until_ready(focal_loss(logits, labels, alpha=1.0, gamma=2.0))
    ref = _reference_focal_loss(logits, labels, alpha=1.0, gamma=2.0)
    assert jnp.allclose(loss, ref, rtol=1e-5, atol=1e-6), (loss, ref)

    # Case 2: ignore_label + N not divisible by the 128-row tile
    # (exercises the partial-block lane mask on the class-major path).
    N2 = 200
    logits2 = jax.random.normal(k3, (N2, C), dtype=jnp.float32)
    labels2 = jax.random.randint(k4, (N2,), 0, C, dtype=jnp.int32)
    loss2 = jax.block_until_ready(
        focal_loss(logits2, labels2, alpha=0.5, gamma=2.0, ignore_label=3))
    ref2 = _reference_focal_loss(logits2, labels2, alpha=0.5, gamma=2.0,
                                 ignore_label=3)
    assert jnp.allclose(loss2, ref2, rtol=1e-5, atol=1e-6), (loss2, ref2)

    # Case 3: C > 128 -> row-major fallback path, multi-tile.
    N3, C3 = 64, 160
    logits3 = jax.random.normal(k1, (N3, C3), dtype=jnp.float32)
    labels3 = jax.random.randint(k2, (N3,), 0, C3, dtype=jnp.int32)
    loss3 = jax.block_until_ready(
        focal_loss(logits3, labels3, alpha=1.0, gamma=2.0, ignore_label=5))
    ref3 = _reference_focal_loss(logits3, labels3, alpha=1.0, gamma=2.0,
                                 ignore_label=5)
    assert jnp.allclose(loss3, ref3, rtol=1e-5, atol=1e-6), (loss3, ref3)

    print("KERNEL_OK")
</pallas_src>

<mosaic_0001>
module attributes {stable_mosaic.version = 11 : i64} {
  func.func @_focal_kernel_class_major(%arg0: i32, %arg1: memref<10x128xf32, #tpu.memory_space<vmem>>, %arg2: memref<1x128xi32, #tpu.memory_space<vmem>>, %arg3: memref<1x1x128xf32, #tpu.memory_space<vmem>>) attributes {dimension_semantics = [#tpu.dimension_semantics<parallel>], iteration_bounds = array<i64: 2>, scalar_prefetch = 0 : i64, scratch_operands = 0 : i64, tpu.core_type = #tpu.core_type<tc>, window_params = [{transform_indices = @transform_0, window_bounds = array<i64: 10, 128>}, {transform_indices = @transform_1, window_bounds = array<i64: 1, 128>}, {transform_indices = @transform_2, window_bounds = array<i64: 1, 1, 128>}]} {
    %c0 = arith.constant 0 : index
    %c0_0 = arith.constant 0 : index
    %0 = vector.load %arg1[%c0, %c0_0] : memref<10x128xf32, #tpu.memory_space<vmem>>, vector<10x128xf32>
    %c0_1 = arith.constant 0 : index
    %c0_2 = arith.constant 0 : index
    %1 = vector.load %arg2[%c0_1, %c0_2] : memref<1x128xi32, #tpu.memory_space<vmem>>, vector<1x128xi32>
    %cst = arith.constant dense<0xFF800000> : vector<128xf32>
    %2 = vector.multi_reduction <maximumf>, %0, %cst [0] : vector<10x128xf32> to vector<128xf32>
    %3 = vector.shape_cast %2 : vector<128xf32> to vector<1x128xf32>
    %4 = vector.broadcast %3 : vector<1x128xf32> to vector<10x128xf32>
    %5 = arith.subf %0, %4 : vector<10x128xf32>
    %6 = math.exp %5 : vector<10x128xf32>
    %cst_3 = arith.constant dense<0.000000e+00> : vector<128xf32>
    %7 = vector.multi_reduction <add>, %6, %cst_3 [0] : vector<10x128xf32> to vector<128xf32>
    %8 = vector.shape_cast %7 : vector<128xf32> to vector<1x128xf32>
    %9 = tpu.iota {dimensions = array<i32: 0>} : vector<10x128xi32>
    %10 = vector.broadcast %1 : vector<1x128xi32> to vector<10x128xi32>
    %11 = arith.cmpi eq, %9, %10 : vector<10x128xi32>
    %cst_4 = arith.constant 0.000000e+00 : f32
    %12 = vector.broadcast %cst_4 : f32 to vector<10x128xf32>
    %13 = arith.select %11, %6, %12 : vector<10x128xi1>, vector<10x128xf32>
    %cst_5 = arith.constant dense<0.000000e+00> : vector<128xf32>
    %14 = vector.multi_reduction <add>, %13, %cst_5 [0] : vector<10x128xf32> to vector<128xf32>
    %15 = vector.shape_cast %14 : vector<128xf32> to vector<1x128xf32>
    %16 = arith.divf %15, %8 : vector<1x128xf32>
    %cst_6 = arith.constant 9.99999996E-13 : f32
    %17 = vector.broadcast %cst_6 : f32 to vector<1x128xf32>
    %18 = arith.addf %16, %17 : vector<1x128xf32>
    %19 = math.log %18 : vector<1x128xf32>
    %cst_7 = arith.constant 1.000000e+00 : f32
    %20 = vector.broadcast %cst_7 : f32 to vector<1x128xf32>
    %21 = arith.subf %20, %16 : vector<1x128xf32>
    %22 = arith.mulf %21, %21 : vector<1x128xf32>
    %cst_8 = arith.constant -1.000000e+00 : f32
    %23 = vector.broadcast %cst_8 : f32 to vector<1x128xf32>
    %24 = arith.mulf %23, %22 : vector<1x128xf32>
    %25 = arith.mulf %24, %19 : vector<1x128xf32>
    %c128_i32 = arith.constant 128 : i32
    %26 = arith.muli %arg0, %c128_i32 : i32
    %27 = tpu.iota {dimensions = array<i32: 1>} : vector<1x128xi32>
    %28 = vector.broadcast %26 : i32 to vector<1x128xi32>
    %29 = arith.addi %28, %27 : vector<1x128xi32>
    %c256_i32 = arith.constant 256 : i32
    %30 = vector.broadcast %c256_i32 : i32 to vector<1x128xi32>
    %31 = arith.cmpi slt, %29, %30 : vector<1x128xi32>
    %cst_9 = arith.constant 0.000000e+00 : f32
    %32 = vector.broadcast %cst_9 : f32 to vector<1x128xf32>
    %33 = arith.select %31, %25, %32 : vector<1x128xi1>, vector<1x128xf32>
    %34 = vector.shape_cast %33 : vector<1x128xf32> to vector<1x1x128xf32>
    %cst_10 = arith.constant dense<0.000000e+00> : vector<1xf32>
    %35 = vector.multi_reduction <add>, %34, %cst_10 [1, 2] : vector<1x1x128xf32> to vector<1xf32>
    %36 = vector.shape_cast %35 : vector<1xf32> to vector<1x1x1xf32>
    %37 = vector.extract %36[0, 0, 0] : f32 from vector<1x1x1xf32>
    %38 = arith.extui %31 : vector<1x128xi1> to vector<1x128xi32>
    %39 = arith.sitofp %38 : vector<1x128xi32> to vector<1x128xf32>
    %40 = vector.shape_cast %39 : vector<1x128xf32> to vector<1x1x128xf32>
    %cst_11 = arith.constant dense<0.000000e+00> : vector<1xf32>
    %41 = vector.multi_reduction <add>, %40, %cst_11 [1, 2] : vector<1x1x128xf32> to vector<1xf32>
    %42 = vector.shape_cast %41 : vector<1xf32> to vector<1x1x1xf32>
    %43 = vector.extract %42[0, 0, 0] : f32 from vector<1x1x1xf32>
    %44 = tpu.iota {dimensions = array<i32: 2>} : vector<1x1x128xi32>
    %c0_i32 = arith.constant 0 : i32
    %45 = vector.broadcast %c0_i32 : i32 to vector<1x1x128xi32>
    %46 = arith.cmpi eq, %44, %45 : vector<1x1x128xi32>
    %c1_i32 = arith.constant 1 : i32
    %47 = vector.broadcast %c1_i32 : i32 to vector<1x1x128xi32>
    %48 = arith.cmpi eq, %44, %47 : vector<1x1x128xi32>
    %cst_12 = arith.constant 0.000000e+00 : f32
    %49 = vector.broadcast %43 : f32 to vector<1x1x128xf32>
    %50 = vector.broadcast %cst_12 : f32 to vector<1x1x128xf32>
    %51 = arith.select %48, %49, %50 : vector<1x1x128xi1>, vector<1x1x128xf32>
    %52 = vector.broadcast %37 : f32 to vector<1x1x128xf32>
    %53 = arith.select %46, %52, %51 : vector<1x1x128xi1>, vector<1x1x128xf32>
    %c0_13 = arith.constant 0 : index
    %c0_14 = arith.constant 0 : index
    %c0_15 = arith.constant 0 : index
    %54 = vector.load %arg3[%c0_13, %c0_14, %c0_15] : memref<1x1x128xf32, #tpu.memory_space<vmem>>, vector<1x1x128xf32>
    tpu.vector_store %arg3[%c0_13, %c0_14, %c0_15], %53 {strides = array<i32>} : memref<1x1x128xf32, #tpu.memory_space<vmem>>, vector<1x1x128xf32>,
    return
  }
  func.func @transform_0(%arg0: i32) -> (i32, i32) {
    %c0_i32 = arith.constant 0 : i32
    %c0_i32_0 = arith.constant 0 : i32
    return %c0_i32, %arg0 : i32, i32
  }
  func.func @transform_1(%arg0: i32) -> (i32, i32) {
    %c0_i32 = arith.constant 0 : i32
    %c0_i32_0 = arith.constant 0 : i32
    return %c0_i32, %arg0 : i32, i32
  }
  func.func @transform_2(%arg0: i32) -> (i32, i32, i32) {
    %c0_i32 = arith.constant 0 : i32
    %c0_i32_0 = arith.constant 0 : i32
    %c0_i32_1 = arith.constant 0 : i32
    return %arg0, %c0_i32, %c0_i32_0 : i32, i32, i32
  }
}

</mosaic_0001>

<bundles_post_ra>
// kernel: tpu_custom_call.1
= control target key start
LH: loop header
LB: loop body
LE: loop exit
PB: predicated region body
PF: predicated region fallthrough
CT: control target
= control target key end

     0   :  { %7 = vsyncpa [#allocation3], 0  ;;  %s813_s0 = inlined_call_operand.hbm [shape: f32[10,256], index: 0, kind: input, shape index: {}]   ;;  %s814_s1 = inlined_call_operand.hbm [shape: s32[1,256], index: 1, kind: input, shape index: {}]   ;;  %s815_s2 = inlined_call_operand.hbm [shape: f32[2,1,128], index: 2, kind: output, shape index: {}]  }
   0x1   :  { %9 = vsyncpa [#allocation3 + $0x1], 0 }
   0x2   :  { %10 = vsyncpa [#allocation6], 0 }
   0x3   :  { %12 = vsyncpa [#allocation6 + $0x1], 0 }
   0x4   :  { %13 = vsyncpa [#allocation4], 0 }
   0x5   :  { %15 = vsyncpa [#allocation4 + $0x1], 0  ;;  %s613_s9 = smov 0   ;;  %s615_s10 = smov 0  }
   0x6   :  { %s617_s11 = smov 0   ;;  %s619_s12 = smov 0  }
   0x7 LB: > { %s634_s13 = sadd.s32 4294967295, %s589_s12   ;;  %s384_s14 = sadd.s32 4294967294, %s589_s12   ;;  %s589_s12 = sphi %s619_s12, %s833_s12   ;;  %s585_s11 = sphi %s617_s11, %s832_s11   ;;  %s581_s10 = sphi %s615_s10, %s831_s10   ;;  %s577_s9 = sphi %s613_s9, %s830_s9  }
   0x8   : > { %s638_s15 = sadd.s32 1, %s589_s12   ;;  %s28_s16 = sadd.s32 1, %s585_s11 }
   0x9   : > { %s25_s17 = ssub.s32 %s589_s12, %s638_s15  ;;  %p35_p0 = scmp.ne.s32.totalorder %s585_s11, %s581_s10 }
   0xa   : > { %p26_p1 = scmp.eq.s32.totalorder %s25_s17, 0  ;;  %p36_p2 = scmp.eq.s32.totalorder %s589_s12, 0 }
   0xb   : > { %p41_p3 = scmp.ne.s32.totalorder %s581_s10, %s577_s9  ;;  %p42_p4 = scmp.eq.s32.totalorder %s634_s13, 0 }
   0xc   : > { %s650_s18 = scalar_select %p26_p1, %s585_s11, %s28_s16  }
   0xd   : > { %p652_p5 = por %p36_p2, %p35_p0  ;;  %p656_p6 = por %p42_p4, %p41_p3 }
   0xe   : > { %p91_p7 = scmp.eq.s32.totalorder %s634_s13, 1  ;;  %p97_p8 = scmp.eq.s32.totalorder %s384_s14, 1 }
   0xf   : > { %s819_s20 = scalar_select %p656_p6, 1, 0 }
  0x10   : > { %p419_p10 = scmp.lt.s32.totalorder %s589_s12, 2  ;;  %p663_p11 = por %p91_p7, %p35_p0 }
  0x11   : > { %p667_p12 = por %p97_p8, %p41_p3  ;;  %s672_s23 = sand.u32 1, %s585_s11  }
  0x12   : > { %s820_s21 = scalar_select %p663_p11, 1, 0 }
  0x13   : > { %s821_s22 = scalar_select %p667_p12, 1, 0 }
  0x14   : > { %s388_s24 = sshll.u32 %s589_s12, 7  ;;  %s387_s25 = sshll.u32 %s672_s23, 4 }
  0x15   : > { %s679_s28 = scalar_lea.hbm %s813_s0, %s388_s24  ;;  %s121_s29 = scalar_lea.vmem [#allocation2], %s387_s25 }
  0x16   : > { %s127_s30 = sshll.u32 %s121_s29, 4  ;;  %p683_p13 = pnand %p419_p10, %p652_p5  ;;  %s687_s30 = int_to_ptr.vmem [resolvable:$true] %s127_s30 }
  0x17   : > { %s118_s4 = scalar_lea.sflag [#allocation3], %s672_s23  ;;  %s465_s5 = scalar_lea.hbm %s679_s28, 256 }
  0x18   : > { %p466_p1 = scmp.ne.s32.totalorder %s679_s28, %s465_s5  ;;  %p467_p2 = pneg %p683_p13 }
  0x19   : > { %s470_s8 = scalar_lea.hbm %s813_s0, 512  ;;  %p471_p5 = scmp.lt.s32.totalorder %s679_s28, %s813_s0 }
  0x1a   : > { %p468_p3 = pnand %p467_p2, %p466_p1  ;;  %p472_p7 = scmp.lt.s32.totalorder %s470_s8, %s465_s5 }
  0x1c   : > { %p469_p4 = pneg %p468_p3  ;;  %p473_p8 = por %p472_p7, %p471_p5 }
  0x1e   : > { %p474_p10 = pnand %p473_p8, %p469_p4 }
  0x20   : > { %477 = shalt.err (!%p474_p10)
}
  0x21   : > { %s478_s17 = scalar_lea.vmem %s687_s30, 256  ;;  %s591_s19 = smov [#allocation2]  }
  0x22   : > { %p479_p9 = scmp.ne.s32.totalorder %s687_s30, %s478_s17  ;;  %s483_s24 = sshll.u32 %s591_s19, 4  ;;  %s484_s24 = int_to_ptr.vmem [resolvable:$false] %s483_s24 }
  0x23   : > { %s485_s25 = scalar_lea.vmem %s484_s24, 512  ;;  %p486_p0 = scmp.lt.s32.totalorder %s687_s30, %s484_s24 }
  0x24   : > { %p481_p1 = pnand %p479_p9, %p467_p2  ;;  %p487_p12 = scmp.lt.s32.totalorder %s485_s25, %s478_s17 }
  0x26   : > { %p482_p3 = pneg %p481_p1  ;;  %p488_p11 = por %p487_p12, %p486_p0 }
  0x28   : > { %p489_p5 = pnand %p488_p11, %p482_p3 }
  0x2a   : > { %492 = shalt.err (!%p489_p5)
}
  0x2b   : > { %s592_s26 = smov 256   ;;  %s593_s27 = smov 128  }
  0x2c   : > { %s594_s29 = smov 8   ;;  %p152_p9 = scmp.lt.s32.totalorder %s589_s12, 3 }
  0x2d   : > { %411 = dma.hbm_to_vmem [thread:$0]  (!%p683_p13), %s679_s28, 256, %s687_s30, %s118_s4, %s592_s26, %s593_s27, %s594_s29  }
  0x2e   : > { %s389_s5 = sshll.u32 %s589_s12, 4  ;;  %p823_p11 = scmp.ge.s32.totalorder %s589_s12, 1 }
  0x2f   : > { %s728_s14 = scalar_lea.hbm %s814_s1, %s389_s5  ;;  %s140_s16 = scalar_lea.vmem [#allocation5], %s672_s23 }
  0x30   : > { %p721_p12 = pnand %p823_p11, %p152_p9  ;;  %s147_s17 = sshll.u32 %s140_s16, 4  ;;  %s148_s17 = int_to_ptr.vmem [resolvable:$true] %s147_s17 }
  0x31   : > { %s138_s19 = scalar_lea.sflag [#allocation6], %s672_s23  ;;  %s493_s28 = scalar_lea.hbm %s728_s14, 16 }
  0x32   : > { %s824_s6 = scalar_select %p721_p12, 1, 0 }
  0x33   : > { %p494_p0 = scmp.ne.s32.totalorder %s728_s14, %s493_s28  ;;  %s498_s24 = scalar_lea.hbm %s814_s1, 32 }
  0x34   : > { %p499_p8 = scmp.lt.s32.totalorder %s728_s14, %s814_s1  ;;  %p500_p10 = scmp.lt.s32.totalorder %s498_s24, %s493_s28 }
  0x35   : > { %p496_p4 = pnand %p494_p0, %p467_p2 }
  0x36   : > { %p501_p1 = por %p500_p10, %p499_p8 }
  0x37   : > { %p497_p7 = pneg %p496_p4 }
  0x39   : > { %p502_p3 = pnand %p501_p1, %p497_p7 }
  0x3b   : > { %505 = shalt.err (!%p502_p3)
}
  0x3c   : > { %s506_s27 = scalar_lea.vmem %s148_s17, 16  ;;  %s595_s23 = smov [#allocation5]  }
  0x3d   : > { %p507_p5 = scmp.ne.s32.totalorder %s148_s17, %s506_s27  ;;  %s511_s29 = sshll.u32 %s595_s23, 4  ;;  %s512_s29 = int_to_ptr.vmem [resolvable:$false] %s511_s29 }
  0x3e   : > { %s513_s5 = scalar_lea.vmem %s512_s29, 32  ;;  %p514_p0 = scmp.lt.s32.totalorder %s148_s17, %s512_s29 }
  0x3f   : > { %p509_p9 = pnand %p507_p5, %p467_p2  ;;  %p515_p4 = scmp.lt.s32.totalorder %s513_s5, %s506_s27 }
  0x41   : > { %p510_p11 = pneg %p509_p9  ;;  %p516_p6 = por %p515_p4, %p514_p0 }
  0x43   : > { %p517_p12 = pnand %p516_p6, %p510_p11 }
  0x45   : > { %520 = shalt.err (!%p517_p12)
}
  0x46   : > { %414 = dma.hbm_to_vmem [thread:$0]  (!%p683_p13), %s728_s14, 16, %s148_s17, %s138_s19  }
  0x47   : > { %p825_p7 = scmp.ne.s32.totalorder %s824_s6, 0 }
  0x48   : > { %s753_s7 = sand.u32 (!%p825_p7), 1, %s581_s10   ;;  %p826_p2 = scmp.ne.s32.totalorder (!%p825_p7), %s819_s20, 0 }
  0x49   : > { %156 = sbr.rel (%p825_p7) target bundleno = 389 (0x185), region = 28  ;;  %s391_s8 = sshll.u32 (!%p825_p7), %s753_s7, 4 }
  0x4a   : > { %s159_s16 = scalar_lea.sflag (!%p825_p7), [#allocation3], %s753_s7  ;;  %s162_s28 = scalar_lea.vmem (!%p825_p7), [#allocation2], %s391_s8 }
  0x4e   : > { %564 = dma.done.wait (%p826_p2), %s159_s16, 256  }
  0x4f   : > { %566 = vsyncadd (%p826_p2), %s159_s16, 4294967040  ;;  %s168_s3 = scalar_lea.sflag [#allocation6], %s753_s7  ;;  %s170_s6 = scalar_lea.vmem [#allocation5], %s753_s7 }
  0x50   : > { %568 = dma.done.wait (%p826_p2), %s168_s3, 16  }
  0x51   : > { %570 = vsyncadd (%p826_p2), %s168_s3, 4294967280  ;;  %vm197_vm0 = vcmask 1041408   ;;  %v194_v0 = vld [vmem:[%s162_s28] sm:$0xff]  ;;  %v195_v1 = vld [vmem:[%s162_s28 + $0x8] sm:$0x3]  ;;  %v220_v14 = vlaneseq  ;;  %s393_s20 = sshll.u32 %s634_s13, 7 }
  0x52   : > { %v198_v2 = vsel %vm197_vm0, %v195_v1, -inf  ;;  %v392_v16 = vld [vmem:[%s170_s6] ss:$0 sm:$0xff]  ;;  %v251_v44 = vstv %s393_s20  ;;  %vm255_vm4 = vcmask 1040384   ;;  %v596_v51 = vmov 0.0   ;;  %s395_s14 = sshll.u32 %s634_s13, 4 }
  0x53   : > { %v199_v3 = vmax.f32 %v194_v0, %v198_v2  ;;  %v221_v15 = vshrl.u32 %v220_v14, 7  ;;  %v250_v42 = vand.u32 127, %v220_v14  ;;  %s193_s19 = scalar_lea.vmem [#allocation7], %s753_s7  ;;  %s776_s26 = scalar_lea.hbm %s815_s2, %s395_s14 }
  0x54   : > { %s298_s30 = sshll.u32 %s193_s19, 4  ;;  %s286_s27 = scalar_lea.sflag [#allocation4], %s753_s7  ;;  %s299_s30 = int_to_ptr.vmem [resolvable:$true] %s298_s30 }
  0x55   : > { %v200_v4 = vrot.slane %v199_v3, 4  ;;  %v222_v17 = vadd.s32 8, %v221_v15  ;;  %vm227_vm1 = vcmp.eq.s32.totalorder %v221_v15, %v392_v16  ;;  %v252_v45 = vadd.s32 %v251_v44, %v250_v42  ;;  %s521_s13 = scalar_lea.vmem %s299_s30, 16  ;;  %p827_p13 = scmp.ne.s32.totalorder %s820_s21, 0 }
  0x56   : > { %vm279_vm5 = vcmp.eq.s32.totalorder %v250_v42, 1  ;;  %vm278_vm6 = vcmp.eq.s32.totalorder %v250_v42, 0  ;;  %p522_p6 = scmp.ne.s32.totalorder %s299_s30, %s521_s13  ;;  %s597_s23 = smov [#allocation7]  }
  0x57   : > { %v201_v5 = vmax.f32 %v199_v3, %v200_v4  ;;  %vm228_vm2 = vcmp.eq.s32.totalorder %v222_v17, %v392_v16  ;;  %vm253_vm3 = vcmp.lt.s32.totalorder %v252_v45, 256  ;;  %s525_s29 = sshll.u32 %s597_s23, 4  ;;  %s526_s29 = int_to_ptr.vmem [resolvable:$false] %s525_s29 }
  0x58   : > { %v394_v52 = vsel %vm253_vm3, 1.0, %v596_v51  ;;  %p523_p12 = pnand %p522_p6, %p827_p13  ;;  %s527_s5 = scalar_lea.vmem %s526_s29, 32 }
  0x59   : > { %v202_v6 = vrot.slane %v201_v5, 2  ;;  %v268_v54 = vsel %vm255_vm4, %v394_v52, 0.0  ;;  %p528_p10 = scmp.lt.s32.totalorder %s299_s30, %s526_s29  ;;  %p529_p1 = scmp.lt.s32.totalorder %s527_s5, %s521_s13 }
  0x5a   : > { %p524_p8 = pneg %p523_p12 }
  0x5b   : > { %v203_v7 = vmax.f32 %v201_v5, %v202_v6  ;;  %p530_p3 = por %p529_p1, %p528_p10 }
  0x5d   : > { %v204_v8 = vrot.slane %v203_v7, 1  ;;  %p531_p5 = pnand %p530_p3, %p524_p8 }
  0x5f   : > { %v205_v9 = vmax.f32 %v203_v7, %v204_v8 }
  0x61   : > { %v206_v10 = vsub.f32 %v194_v0, %v205_v9  ;;  %v207_v11 = vsub.f32 %v195_v1, %v205_v9 }
  0x63   : > { %v208_v12 = vmul.f32 1.442695, %v206_v10  ;;  %v210_v13 = vmul.f32 1.442695, %v207_v11 }
  0x65   : > { %457 = vpow2.f32 %v208_v12 }
  0x66   : > { %459 = vpow2.f32 %v210_v13 }
  0x72   : > { %v458_v18 = vpop.eup %457 }
  0x73   : > { %v460_v19 = vpop.eup %459  ;;  %v229_v20 = vsel %vm227_vm1, %v458_v18, 0.0 }
  0x74   : > { %v212_v21 = vsel %vm197_vm0, %v460_v19, 0.0  ;;  %v230_v22 = vsel %vm228_vm2, %v460_v19, 0.0 }
  0x75   : > { %v213_v23 = vadd.f32 %v458_v18, %v212_v21  ;;  %v231_v24 = vsel %vm197_vm0, %v230_v22, 0.0 }
  0x76   : > { %v232_v25 = vadd.f32 %v231_v24, %v229_v20 }
  0x77   : > { %v214_v26 = vrot.slane %v213_v23, 4 }
  0x78   : > { %v233_v28 = vrot.slane %v232_v25, 4 }
  0x79   : > { %v215_v27 = vadd.f32 %v214_v26, %v213_v23 }
  0x7a   : > { %v234_v31 = vadd.f32 %v233_v28, %v232_v25 }
  0x7b   : > { %v216_v29 = vrot.slane %v215_v27, 2 }
  0x7c   : > { %v235_v34 = vrot.slane %v234_v31, 2 }
  0x7d   : > { %v217_v30 = vadd.f32 %v216_v29, %v215_v27 }
  0x7e   : > { %v236_v35 = vadd.f32 %v235_v34, %v234_v31 }
  0x7f   : > { %v218_v32 = vrot.slane %v217_v30, 1 }
  0x80   : > { %v237_v36 = vrot.slane %v236_v35, 1 }
  0x81   : > { %v219_v33 = vadd.f32 %v218_v32, %v217_v30 }
  0x82   : > { %v238_v37 = vadd.f32 %v237_v36, %v236_v35 }
  0x83   : > { %461 = vrcp.f32 %v219_v33 }
  0x90   : > { %v462_v38 = vpop.eup %461 }
  0x91   : > { %v240_v39 = vmul.f32 %v462_v38, %v238_v37 }
  0x93   : > { %v241_v40 = vadd.f32 1e-12, %v240_v39  ;;  %v244_v41 = vsub.f32 1.0, %v240_v39 }
  0x95   : > { %463 = vlog2.f32 %v241_v40  ;;  %v245_v43 = vmul.f32 %v244_v41, %v244_v41 }
  0x97   : > { %v246_v46 = vmul.f32 -1.0, %v245_v43 }
  0xa2   : > { %v464_v47 = vpop.eup %463 }
  0xa3   : > { %v243_v48 = vmul.f32 0.6931472, %v464_v47 }
  0xa5   : > { %v247_v49 = vmul.f32 %v246_v46, %v243_v48 }
  0xa7   : > { %v254_v50 = vsel %vm253_vm3, %v247_v49, 0.0 }
  0xa8   : > { %v256_v53 = vsel %vm255_vm4, %v254_v50, 0.0 }
  0xa9   : > { %257 = vadd.xlane.f32.xlu0 %v256_v53 }
  0xad   : > { %269 = vadd.xlane.f32.xlu0 %v268_v54 }
 0x132   : > { %v258_v55 = vpop.xlane.xlu0 %257 }
 0x133   : > { %v259_v56 = vrot.slane %v258_v55, 4 }
 0x135   : > { %v260_v57 = vadd.f32 %v259_v56, %v258_v55 }
 0x136   : > { %v270_v58 = vpop.xlane.xlu0 %269 }
 0x137   : > { %v261_v59 = vrot.slane %v260_v57, 2  ;;  %v271_v60 = vrot.slane %v270_v58, 4 }
 0x139   : > { %v272_v61 = vadd.f32 %v271_v60, %v270_v58  ;;  %v262_v62 = vadd.f32 %v261_v59, %v260_v57 }
 0x13b   : > { %v273_v63 = vrot.slane %v272_v61, 2  ;;  %v263_v0 = vrot.slane %v262_v62, 1 }
 0x13d   : > { %v274_v1 = vadd.f32 %v273_v63, %v272_v61  ;;  %v264_v2 = vadd.f32 %v263_v0, %v262_v62 }
 0x13f   : > { %398 = vpush %v264_v2  ;;  %v275_v3 = vrot.slane %v274_v1, 1 }
 0x141   : > { %v276_v4 = vadd.f32 %v275_v3, %v274_v1 }
 0x143   : > { %400 = vpush %v276_v4 }
 0x170   : > { %s399_s17 = spop %398 }
 0x171   : > { %v282_v6 = vstv %s399_s17 }
 0x174   : > { %s401_s4 = spop %400 }
 0x175   : > { %v280_v5 = vstv %s401_s4 }
 0x176   : > { %v281_v7 = vsel %vm279_vm5, %v280_v5, 0.0 }
 0x177   : > { %v283_v8 = vsel %vm278_vm6, %v282_v6, %v281_v7 }
 0x178   : > { %284 = vst [vmem:[%s193_s19] sm:$0x1] %v283_v8 }
 0x179   : > { %534 = shalt.err (!%p531_p5)
}
 0x17a   : > { %s535_s8 = scalar_lea.hbm %s776_s26, 16  ;;  %s539_s28 = scalar_lea.hbm %s815_s2, 32 }
 0x17b   : > { %p536_p9 = scmp.ne.s32.totalorder %s776_s26, %s535_s8  ;;  %p540_p4 = scmp.lt.s32.totalorder %s776_s26, %s815_s2 }
 0x17c   : > { %p541_p7 = scmp.lt.s32.totalorder %s539_s28, %s535_s8 }
 0x17d   : > { %p537_p11 = pnand %p536_p9, %p827_p13 }
 0x17e   : > { %p542_p2 = por %p541_p7, %p540_p4 }
 0x17f   : > { %p538_p0 = pneg %p537_p11 }
 0x181   : > { %p543_p6 = pnand %p542_p2, %p538_p0 }
 0x183   : > { %546 = shalt.err (!%p543_p6)
}
 0x184   : > { %406 = dma.vmem_to_hbm [thread:$0]  (%p827_p13), %s299_s30, 16, %s776_s26, %s286_s27  }
 0x185 PF: > { %s310_s20 = sand.u32 1, %s577_s9   ;;  %p828_p12 = scmp.ne.s32.totalorder %s821_s22, 0 }
 0x186   : > { %p829_p8 = scmp.ge.s32.totalorder %s589_s12, 2  ;;  %s311_s14 = scalar_lea.sflag [#allocation4], %s310_s20 }
 0x188   : > { %p416_p10 = pnand %p829_p8, %p828_p12 }
 0x18a   : > { %p417_p1 = pneg %p416_p10 }
 0x18c   : > { %572 = dma.done.wait (%p417_p1), %s311_s14, 16  }
 0x18d   : > { %574 = vsyncadd (%p417_p1), %s311_s14, 4294967280  ;;  %p18_p3 = scmp.ge.s32.totalorder %s638_s15, 4   ;;  %s830_s9 = smov %s581_s10 }
 0x18e   : > { %s831_s10 = smov %s585_s11  ;;  %s832_s11 = smov %s650_s18 }
 0x18f   : > { %s833_s12 = smov %s638_s15  ;;  %20 = sbr.rel (!%p18_p3) target bundleno = 7 (0x7), region = 86 }
 0x194   :  { %315 = vsyncpa [#allocation3], 1 }
 0x195   :  { %317 = vsyncpa [#allocation3 + $0x1], 1 }
 0x196   :  { %318 = vsyncpa [#allocation6], 1 }
 0x197   :  { %320 = vsyncpa [#allocation6 + $0x1], 1 }
 0x198   :  { %321 = vsyncpa [#allocation4], 1 }
 0x199   :  { %323 = vsyncpa [#allocation4 + $0x1], 1 }

</bundles_post_ra>
